<compile_context>
chip_gen: v7x
topology: tpu7x:2x2x1
jax: 0.10.0
libtpu: 0.0.40
codegen_flags: <defaults>
</compile_context>

<pallas_src>
import math

import jax
import jax.numpy as jnp
from jax.experimental import pallas as pl
from jax.experimental.pallas import tpu as pltpu


def _attention_kernel(x_ref, w_ref, b_ref, o_ref):
    # x_ref: (TB, S, F)  native dtype
    # w_ref: (1, 1, F)   f32 (lane-dense weight)
    # b_ref: (1, S, 1)   f32
    # o_ref: (TB, F)
    x = x_ref[...]                      # no eager full-tile upcast
    w = w_ref[...]                      # (1, 1, F)
    b = b_ref[...]                      # (1, S, 1)

    # eij = tanh(x @ w + b), kept in (TB, S, 1) layout throughout (VPU mul +
    # reduce over the lane/F axis; avoids relayouts around an N=1 matmul).
    eij = jnp.sum(x * w.astype(x.dtype), axis=-1, keepdims=True,
                  dtype=jnp.float32)                       # (TB, S, 1)
    eij = jnp.tanh(eij + b)                                # (TB, S, 1)

    p = jnp.exp(eij)                                       # (TB, S, 1), f32
    denom = jnp.sum(p, axis=1)                             # (TB, 1)

    # Fold the normalization:  out = (sum_s p*x)/denom + 1e-10 * (sum_s x)
    acc = jnp.sum(x * p.astype(x.dtype), axis=1, dtype=jnp.float32)   # (TB, F)
    xsum = jnp.sum(x, axis=1, dtype=jnp.float32)                      # (TB, F)

    # Exact reciprocal on a tiny (TB, 1) vector (approx=True would perturb
    # low bits beyond the 1e-5 check).
    out = acc / denom + jnp.float32(1e-10) * xsum
    o_ref[...] = out.astype(o_ref.dtype)


def _round_up(n, m):
    return ((n + m - 1) // m) * m


def _pick_block_b(B, S, F, itemsize):
    """Pick a batch tile: multiple of 8, ~2 MiB x tile, >=8 grid steps when possible."""
    bytes_per_batch_row = S * F * itemsize
    # ~2 MiB x tile -> ~4 MiB double-buffered: fits v5e's 16 MiB scoped-VMEM
    # default and leaves large headroom on v7x's 64 MiB physical VMEM.
    target_tile_bytes = 2 * 1024 * 1024
    block_b = max(8, (target_tile_bytes // bytes_per_batch_row) // 8 * 8)
    # Prefer >= 8 grid steps (software pipelining; lets v7x shard the parallel
    # batch axis across both TensorCores) when the batch is large enough.
    if B >= 16:
        block_b = min(block_b, max(8, _round_up(pl.cdiv(B, 8), 8)))
    # Never larger than the (padded) batch.
    block_b = min(block_b, _round_up(B, 8))
    return block_b


def attention_forward(x, weight, bias, *, block_b=None):
    """Pallas implementation of PyTorch `Attention.forward` (mask=None).

    x:      (B, S, F)
    weight: (F, 1)
    bias:   (S,)
    returns (B, F)
    """
    B, S, F = x.shape
    itemsize = jnp.dtype(x.dtype).itemsize

    if block_b is None:
        block_b = _pick_block_b(B, S, F, itemsize)
    else:
        # (block_b, F) output tile: second-to-last dim must be a multiple of 8.
        block_b = max(8, _round_up(block_b, 8))

    # Pad the batch so it divides evenly; padded (zero) rows produce zero
    # output and are sliced off below.
    B_pad = _round_up(B, block_b)
    x_in = x if B_pad == B else jnp.pad(x, ((0, B_pad - B), (0, 0), (0, 0)))

    # Lane-dense weight (1,1,F); bias broadcast as (1,S,1).
    w_in = weight.reshape(1, 1, F).astype(jnp.float32)
    b_in = bias.reshape(1, S, 1).astype(jnp.float32)

    # NOTE: for production shapes F should be a multiple of 128 so the output
    # store is an unmasked lane-dense vst; we do NOT pad F here because that
    # would inflate the (dominant) x HBM traffic for this mem-bound kernel.
    grid = (B_pad // block_b,)

    out = pl.pallas_call(
        _attention_kernel,
        out_shape=jax.ShapeDtypeStruct((B_pad, F), x.dtype),
        grid_spec=pltpu.PrefetchScalarGridSpec(
            num_scalar_prefetch=0,
            grid=grid,
            in_specs=[
                pl.BlockSpec((block_b, S, F), lambda i: (i, 0, 0)),   # x tile
                pl.BlockSpec((1, 1, F), lambda i: (0, 0, 0)),         # weight
                pl.BlockSpec((1, S, 1), lambda i: (0, 0, 0)),         # bias
            ],
            out_specs=pl.BlockSpec((block_b, F), lambda i: (i, 0)),
        ),
        compiler_params=pltpu.CompilerParams(
            dimension_semantics=("parallel",)),
    )(x_in, w_in, b_in)

    return out[:B] if B_pad != B else out


def attention_reference(x, weight, bias):
    """Pure-JAX reference matching the PyTorch forward exactly."""
    B, S, F = x.shape
    eij = (x.reshape(-1, F) @ weight).reshape(B, S)
    eij = eij + bias
    eij = jnp.tanh(eij)
    a = jnp.exp(eij)
    a = a / jnp.sum(a, axis=1, keepdims=True) + 1e-10
    return jnp.sum(x * a[:, :, None], axis=1)


if __name__ == "__main__":
    # Small shapes consistent with the module: batch=2, step_dim=8, feature_dim=32
    B, STEP, FEAT = 2, 8, 32

    key = jax.random.PRNGKey(0)
    kx, kw = jax.random.split(key)

    x = jax.random.normal(kx, (B, STEP, FEAT), dtype=jnp.float32)

    # Deterministic parameter init mirroring __init__:
    #   weight: xavier_uniform_ on shape (feature_dim, 1); b: zeros(step_dim)
    xavier_bound = math.sqrt(6.0 / (FEAT + 1))
    weight = jax.random.uniform(kw, (FEAT, 1), dtype=jnp.float32,
                                minval=-xavier_bound, maxval=xavier_bound)
    bias = jnp.zeros((STEP,), dtype=jnp.float32)

    out = attention_forward(x, weight, bias)
    out = jax.block_until_ready(out)

    ref = attention_reference(x, weight, bias)
    assert out.shape == (B, FEAT)
    assert jnp.allclose(out, ref, atol=1e-5, rtol=1e-5), "mismatch vs reference"

    # TODO(synk): the optional `mask` argument of the PyTorch forward is not
    # implemented (mask=None path only).
    print("KERNEL_OK")
</pallas_src>

<mosaic_0001>
module attributes {stable_mosaic.version = 11 : i64} {
  func.func @_attention_kernel(%arg0: i32, %arg1: memref<8x8x32xf32, #tpu.memory_space<vmem>>, %arg2: memref<1x1x32xf32, #tpu.memory_space<vmem>>, %arg3: memref<1x8x1xf32, #tpu.memory_space<vmem>>, %arg4: memref<8x32xf32, #tpu.memory_space<vmem>>) attributes {dimension_semantics = [#tpu.dimension_semantics<parallel>], iteration_bounds = array<i64: 1>, scalar_prefetch = 0 : i64, scratch_operands = 0 : i64, tpu.core_type = #tpu.core_type<tc>, window_params = [{transform_indices = @transform_0, window_bounds = array<i64: 8, 8, 32>}, {pipeline_mode = #tpu.pipeline_mode<synchronous>, transform_indices = @transform_1, window_bounds = array<i64: 1, 1, 32>}, {pipeline_mode = #tpu.pipeline_mode<synchronous>, transform_indices = @transform_2, window_bounds = array<i64: 1, 8, 1>}, {transform_indices = @transform_3, window_bounds = array<i64: 8, 32>}]} {
    %c0 = arith.constant 0 : index
    %c0_0 = arith.constant 0 : index
    %c0_1 = arith.constant 0 : index
    %0 = vector.load %arg1[%c0, %c0_0, %c0_1] : memref<8x8x32xf32, #tpu.memory_space<vmem>>, vector<8x8x32xf32>
    %c0_2 = arith.constant 0 : index
    %c0_3 = arith.constant 0 : index
    %c0_4 = arith.constant 0 : index
    %1 = vector.load %arg2[%c0_2, %c0_3, %c0_4] : memref<1x1x32xf32, #tpu.memory_space<vmem>>, vector<1x1x32xf32>
    %c0_5 = arith.constant 0 : index
    %c0_6 = arith.constant 0 : index
    %c0_7 = arith.constant 0 : index
    %2 = vector.load %arg3[%c0_5, %c0_6, %c0_7] : memref<1x8x1xf32, #tpu.memory_space<vmem>>, vector<1x8x1xf32>
    %3 = vector.broadcast %1 : vector<1x1x32xf32> to vector<8x8x32xf32>
    %4 = arith.mulf %0, %3 : vector<8x8x32xf32>
    %cst = arith.constant dense<0.000000e+00> : vector<8x8xf32>
    %5 = vector.multi_reduction <add>, %4, %cst [2] : vector<8x8x32xf32> to vector<8x8xf32>
    %6 = vector.shape_cast %5 : vector<8x8xf32> to vector<8x8x1xf32>
    %7 = vector.broadcast %2 : vector<1x8x1xf32> to vector<8x8x1xf32>
    %8 = arith.addf %6, %7 : vector<8x8x1xf32>
    %9 = math.tanh %8 : vector<8x8x1xf32>
    %10 = math.exp %9 : vector<8x8x1xf32>
    %cst_8 = arith.constant dense<0.000000e+00> : vector<8x1xf32>
    %11 = vector.multi_reduction <add>, %10, %cst_8 [1] : vector<8x8x1xf32> to vector<8x1xf32>
    %12 = vector.broadcast %10 : vector<8x8x1xf32> to vector<8x8x32xf32>
    %13 = arith.mulf %0, %12 : vector<8x8x32xf32>
    %cst_9 = arith.constant dense<0.000000e+00> : vector<8x32xf32>
    %14 = vector.multi_reduction <add>, %13, %cst_9 [1] : vector<8x8x32xf32> to vector<8x32xf32>
    %cst_10 = arith.constant dense<0.000000e+00> : vector<8x32xf32>
    %15 = vector.multi_reduction <add>, %0, %cst_10 [1] : vector<8x8x32xf32> to vector<8x32xf32>
    %16 = vector.broadcast %11 : vector<8x1xf32> to vector<8x32xf32>
    %17 = arith.divf %14, %16 : vector<8x32xf32>
    %cst_11 = arith.constant 1.000000e-10 : f32
    %18 = vector.broadcast %cst_11 : f32 to vector<8x32xf32>
    %19 = arith.mulf %18, %15 : vector<8x32xf32>
    %20 = arith.addf %17, %19 : vector<8x32xf32>
    %c0_12 = arith.constant 0 : index
    %c0_13 = arith.constant 0 : index
    %21 = vector.load %arg4[%c0_12, %c0_13] : memref<8x32xf32, #tpu.memory_space<vmem>>, vector<8x32xf32>
    tpu.vector_store %arg4[%c0_12, %c0_13], %20 {strides = array<i32>} : memref<8x32xf32, #tpu.memory_space<vmem>>, vector<8x32xf32>,
    return
  }
  func.func @transform_0(%arg0: i32) -> (i32, i32, i32) {
    %c0_i32 = arith.constant 0 : i32
    %c0_i32_0 = arith.constant 0 : i32
    %c0_i32_1 = arith.constant 0 : i32
    return %arg0, %c0_i32, %c0_i32_0 : i32, i32, i32
  }
  func.func @transform_1(%arg0: i32) -> (i32, i32, i32) {
    %c0_i32 = arith.constant 0 : i32
    %c0_i32_0 = arith.constant 0 : i32
    %c0_i32_1 = arith.constant 0 : i32
    %c0_i32_2 = arith.constant 0 : i32
    return %c0_i32, %c0_i32_0, %c0_i32_1 : i32, i32, i32
  }
  func.func @transform_2(%arg0: i32) -> (i32, i32, i32) {
    %c0_i32 = arith.constant 0 : i32
    %c0_i32_0 = arith.constant 0 : i32
    %c0_i32_1 = arith.constant 0 : i32
    %c0_i32_2 = arith.constant 0 : i32
    return %c0_i32, %c0_i32_0, %c0_i32_1 : i32, i32, i32
  }
  func.func @transform_3(%arg0: i32) -> (i32, i32) {
    %c0_i32 = arith.constant 0 : i32
    %c0_i32_0 = arith.constant 0 : i32
    return %arg0, %c0_i32 : i32, i32
  }
}

</mosaic_0001>

<bundles_post_ra>
// kernel: tpu_custom_call.1
= control target key start
LH: loop header
LB: loop body
LE: loop exit
PB: predicated region body
PF: predicated region fallthrough
CT: control target
= control target key end

     0   :  { %8 = vsyncpa [#allocation3], 0  ;;  %s671_s0 = inlined_call_operand.hbm [shape: f32[8,8,32], index: 0, kind: input, shape index: {}]   ;;  %s672_s1 = inlined_call_operand.vmem [shape: f32[1,1,32], index: 1, kind: input, shape index: {}]   ;;  %s673_s2 = inlined_call_operand.vmem [shape: f32[1,8,1], index: 2, kind: input, shape index: {}]   ;;  %s674_s3 = inlined_call_operand.hbm [shape: f32[8,32], index: 3, kind: output, shape index: {}]  }
   0x1   :  { %9 = vsyncpa [#allocation4], 0  ;;  %s542_s12 = smov [#allocation2]   ;;  %s494_s16 = scalar_lea.hbm %s671_s0, 1024 }
   0x2   :  { %s15_s13 = sshll.u32 %s542_s12, 4  ;;  %p495_p0 = scmp.ne.s32.totalorder %s671_s0, %s494_s16  ;;  %s16_s13 = int_to_ptr.vmem [resolvable:$true] %s15_s13 }
   0x3   :  { %p498_p1 = scmp.lt.u32.totalorder %s494_s16, %s671_s0 }
   0x5   :  { %p500_p2 = pnand %p498_p1, %p495_p0 }
   0x7   :  { %503 = shalt.err (!%p500_p2)
}
   0x8   :  { %s504_s21 = scalar_lea.vmem %s16_s13, 1024  ;;  %p509_p4 = scmp.lt.s32.totalorder %s16_s13, %s16_s13 }
   0x9   :  { %p505_p3 = scmp.ne.s32.totalorder %s16_s13, %s504_s21  ;;  %p510_p5 = scmp.lt.s32.totalorder %s504_s21, %s504_s21 }
   0xb   :  { %p511_p6 = por %p510_p5, %p509_p4 }
   0xd   :  { %p512_p7 = pnand %p511_p6, %p505_p3 }
   0xf   :  { %515 = shalt.err (!%p512_p7)
}
  0x10   :  { %s543_s22 = smov 128   ;;  %s544_s23 = smov 8  }
  0x11   :  { %21 = dma.hbm_to_vmem [thread:$0]  %s671_s0, 1024, %s16_s13, [#allocation3], %s543_s22, %s543_s22, %s544_s23  }
  0x12   :  { %538 = dma.done.wait [#allocation3], 1024  }
  0x13   :  { %539 = vsyncadd [#allocation3], 4294966272  ;;  %v579_v0 = vld [vmem:[#allocation2 + $0x10] sm:$0xff]  ;;  %v438_v1 = vld [vmem:[%s672_s1] ss:$0 sm:$0xff]  ;;  %vm53_vm0 = vcmask 261120  }
  0x14   :  { %v584_v2 = vld [vmem:[#allocation2] sm:$0xff]  ;;  %v47_v3 = vmul.f32 %v438_v1, %v579_v0  ;;  %v588_v5 = vld [vmem:[#allocation2 + $0x18] sm:$0xff]  ;;  %v590_v6 = vld [vmem:[#allocation2 + $0x8] sm:$0xff]  ;;  %v545_v25 = vmov 0   ;;  %vm110_vm1 = vcmask 7168   ;;  %vm407_vm2 = vcmask 1041409  }
  0x15   :  { %v45_v4 = vmul.f32 %v438_v1, %v584_v2  ;;  %v48_v7 = vmul.f32 %v438_v1, %v588_v5  ;;  %v593_v8 = vld [vmem:[#allocation2 + $0x20] sm:$0xff]  ;;  %v46_v11 = vmul.f32 %v438_v1, %v590_v6  ;;  %v598_v12 = vld [vmem:[#allocation2 + $0x28] sm:$0xff]  ;;  %v604_v17 = vld [vmem:[#allocation2 + $0x38] sm:$0xff]  ;;  %444 = vset.pattern.permute.xlu0 %v545_v25  ;;  %445 = vset.pattern.permute.xlu1 %v545_v25  ;;  %vm409_vm3 = vcmask 1042434  }
  0x16   :  { %v60_v9 = vsel %vm53_vm0, %v47_v3, 0.0  ;;  %v49_v15 = vmul.f32 %v438_v1, %v593_v8  ;;  %v50_v16 = vmul.f32 %v438_v1, %v598_v12  ;;  %v52_v20 = vmul.f32 %v438_v1, %v604_v17  ;;  %v609_v21 = vld [vmem:[#allocation2 + $0x30] sm:$0xff]  ;;  %v38_v26 = vld [vmem:[%s673_s2] sm:$0xff]  ;;  %s546_s2 = smov [#allocation5]  }
  0x17   :  { %v54_v10 = vsel %vm53_vm0, %v45_v4, 0.0  ;;  %61 = vadd.xlane.f32.xlu1 %v60_v9  ;;  %v63_v13 = vsel %vm53_vm0, %v48_v7, 0.0  ;;  %v57_v14 = vsel %vm53_vm0, %v46_v11, 0.0  ;;  %v51_v23 = vmul.f32 %v438_v1, %v609_v21  ;;  %s429_s28 = sshll.u32 %s546_s2, 4  ;;  %s430_s28 = int_to_ptr.vmem [resolvable:$true] %s429_s28 }
  0x18   :  { %55 = vadd.xlane.f32.xlu0 %v54_v10  ;;  %v66_v18 = vsel %vm53_vm0, %v49_v15, 0.0  ;;  %v69_v19 = vsel %vm53_vm0, %v50_v16, 0.0  ;;  %v75_v22 = vsel %vm53_vm0, %v52_v20, 0.0  ;;  %vm411_vm4 = vcmask 1043459   ;;  %s516_s29 = scalar_lea.vmem %s430_s28, 128  ;;  %p521_p9 = scmp.lt.s32.totalorder %s430_s28, %s430_s28 }
  0x19   :  { %v72_v24 = vsel %vm53_vm0, %v51_v23, 0.0  ;;  %vm413_vm5 = vcmask 1044484   ;;  %vm415_vm6 = vcmask 1045509   ;;  %vm417_vm7 = vcmask 1046534   ;;  %p517_p8 = scmp.ne.s32.totalorder %s430_s28, %s516_s29  ;;  %p522_p10 = scmp.lt.s32.totalorder %s516_s29, %s516_s29 }
  0x1a   :  { %vm419_vm8 = vcmask 1047559  }
  0x1b   :  { %64 = vadd.xlane.f32.xlu1 %v63_v13  ;;  %p523_p11 = por %p522_p10, %p521_p9 }
  0x1c   :  { %58 = vadd.xlane.f32.xlu0 %v57_v14 }
  0x1d   :  { %p524_p12 = pnand %p523_p11, %p517_p8 }
  0x1f   :  { %70 = vadd.xlane.f32.xlu1 %v69_v19 }
  0x20   :  { %67 = vadd.xlane.f32.xlu0 %v66_v18 }
  0x23   :  { %76 = vadd.xlane.f32.xlu1 %v75_v22 }
  0x24   :  { %73 = vadd.xlane.f32.xlu0 %v72_v24 }
  0xa4   :  { %v62_v27 = vpop.xlane.xlu1 %61 }
  0xa5   :  { %v56_v28 = vpop.xlane.xlu0 %55  ;;  %v80_v29 = vadd.f32 %v62_v27, %v38_v26 }
  0xa6   :  { %v78_v30 = vadd.f32 %v56_v28, %v38_v26 }
  0xa7   :  { %446 = vtanh.f32 %v80_v29 }
  0xa8   :  { %448 = vtanh.f32 %v78_v30  ;;  %v65_v31 = vpop.xlane.xlu1 %64 }
  0xa9   :  { %v59_v32 = vpop.xlane.xlu0 %58  ;;  %v81_v33 = vadd.f32 %v65_v31, %v38_v26 }
  0xaa   :  { %v79_v34 = vadd.f32 %v59_v32, %v38_v26 }
  0xab   :  { %450 = vtanh.f32 %v81_v33 }
  0xac   :  { %452 = vtanh.f32 %v79_v34  ;;  %v71_v36 = vpop.xlane.xlu1 %70 }
  0xad   :  { %v68_v35 = vpop.xlane.xlu0 %67  ;;  %v83_v38 = vadd.f32 %v71_v36, %v38_v26 }
  0xae   :  { %v82_v37 = vadd.f32 %v68_v35, %v38_v26 }
  0xaf   :  { %454 = vtanh.f32 %v83_v38 }
  0xb0   :  { %v77_v39 = vpop.xlane.xlu1 %76  ;;  %456 = vtanh.f32 %v82_v37 }
  0xb1   :  { %v447_v40 = vpop.eup %446  ;;  %v85_v41 = vadd.f32 %v77_v39, %v38_v26  ;;  %v74_v42 = vpop.xlane.xlu0 %73 }
  0xb2   :  { %v449_v43 = vpop.eup %448  ;;  %v98_v44 = vmul.f32 1.442695, %v447_v40  ;;  %v84_v45 = vadd.f32 %v74_v42, %v38_v26 }
  0xb3   :  { %v94_v46 = vmul.f32 1.442695, %v449_v43  ;;  %458 = vtanh.f32 %v85_v41 }
  0xb4   :  { %460 = vpow2.f32 %v98_v44 }
  0xb5   :  { %v451_v47 = vpop.eup %450  ;;  %462 = vpow2.f32 %v94_v46 }
  0xb6   :  { %v453_v48 = vpop.eup %452  ;;  %v100_v49 = vmul.f32 1.442695, %v451_v47  ;;  %464 = vtanh.f32 %v84_v45 }
  0xb7   :  { %v96_v50 = vmul.f32 1.442695, %v453_v48 }
  0xb8   :  { %466 = vpow2.f32 %v100_v49 }
  0xb9   :  { %468 = vpow2.f32 %v96_v50  ;;  %v455_v51 = vpop.eup %454 }
  0xba   :  { %v457_v52 = vpop.eup %456  ;;  %v104_v53 = vmul.f32 1.442695, %v455_v51 }
  0xbb   :  { %v102_v56 = vmul.f32 1.442695, %v457_v52 }
  0xbc   :  { %470 = vpow2.f32 %v104_v53 }
  0xbd   :  { %v459_v54 = vpop.eup %458 }
  0xbe   :  { %v461_v55 = vpop.eup %460  ;;  %v108_v57 = vmul.f32 1.442695, %v459_v54 }
  0xbf   :  { %v463_v58 = vpop.eup %462  ;;  %v125_v59 = vsel %vm110_vm1, %v461_v55, 0.0 }
  0xc0   :  { %v465_v60 = vpop.eup %464  ;;  %472 = vpow2.f32 %v108_v57  ;;  %169 = vperm.xlu0 %444, %v463_v58   ;;  %v126_v61 = vrot.slane %v125_v59, 4  ;;  %v111_v13 = vsel %vm110_vm1, %v463_v58, 0.0 }
  0xc1   :  { %474 = vpow2.f32 %v102_v56  ;;  %v106_v63 = vmul.f32 1.442695, %v465_v60  ;;  %v112_v20 = vrot.slane %v111_v13, 4 }
  0xc2   :  { %v467_v62 = vpop.eup %466  ;;  %v127_v1 = vadd.f32 %v126_v61, %v125_v59 }
  0xc3   :  { %v469_v3 = vpop.eup %468  ;;  %v132_v4 = vsel %vm110_vm1, %v467_v62, 0.0  ;;  %476 = vpow2.f32 %v106_v63  ;;  %v113_v32 = vadd.f32 %v112_v20, %v111_v13  ;;  %v278_v20 = vsel %vm53_vm0, %v590_v6, 0.0 }
  0xc4   :  { %174 = vperm.xlu1 %445, %v469_v3   ;;  %v128_v7 = vrot.slane %v127_v1, 2  ;;  %v133_v9 = vrot.slane %v132_v4, 4  ;;  %v118_v27 = vsel %vm110_vm1, %v469_v3, 0.0 }
  0xc5   :  { %v119_v35 = vrot.slane %v118_v27, 4  ;;  %v114_v41 = vrot.slane %v113_v32, 2 }
  0xc6   :  { %v129_v10 = vadd.f32 %v128_v7, %v127_v1  ;;  %v134_v11 = vadd.f32 %v133_v9, %v132_v4  ;;  %v471_v14 = vpop.eup %470  ;;  %v285_v9 = vsel %vm53_vm0, %v579_v0, 0.0 }
  0xc7   :  { %v146_v18 = vsel %vm110_vm1, %v471_v14, 0.0  ;;  %v120_v43 = vadd.f32 %v119_v35, %v118_v27  ;;  %v115_v48 = vadd.f32 %v114_v41, %v113_v32  ;;  %v286_v13 = vrot.slane %v285_v9, 4 }
  0xc8   :  { %179 = vperm.xlu1 %445, %v461_v55   ;;  %v130_v15 = vrot.slane %v129_v10, 1  ;;  %v135_v16 = vrot.slane %v134_v11, 2  ;;  %v147_v19 = vrot.slane %v146_v18, 4  ;;  %v299_v32 = vsel %vm53_vm0, %v593_v8, 0.0 }
  0xc9   :  { %v121_v50 = vrot.slane %v120_v43, 2  ;;  %v116_v53 = vrot.slane %v115_v48, 1 }
  0xca   :  { %v473_v22 = vpop.eup %472  ;;  %v131_v23 = vadd.f32 %v130_v15, %v129_v10  ;;  %v136_v24 = vadd.f32 %v135_v16, %v134_v11  ;;  %v148_v25 = vadd.f32 %v147_v19, %v146_v18  ;;  %v271_v10 = vsel %vm53_vm0, %v584_v2, 0.0 }
  0xcb   :  { %v160_v26 = vsel %vm110_vm1, %v473_v22, 0.0  ;;  %v475_v28 = vpop.eup %474  ;;  %v122_v54 = vadd.f32 %v121_v50, %v120_v43  ;;  %v117_v57 = vadd.f32 %v116_v53, %v115_v48  ;;  %v272_v15 = vrot.slane %v271_v10, 4 }
  0xcc   :  { %184 = vperm.xlu1 %445, %v467_v62   ;;  %339 = vperm.xlu0 %444, %v131_v23   ;;  %v137_v29 = vrot.slane %v136_v24, 1  ;;  %v161_v30 = vrot.slane %v160_v26, 4  ;;  %v149_v31 = vrot.slane %v148_v25, 2  ;;  %v139_v37 = vsel %vm110_vm1, %v475_v28, 0.0 }
  0xcd   :  { %v477_v38 = vpop.eup %476  ;;  %v140_v44 = vrot.slane %v139_v37, 4  ;;  %v123_v58 = vrot.slane %v122_v54, 1  ;;  %v287_v19 = vadd.f32 %v286_v13, %v285_v9 }
  0xce   :  { %v138_v33 = vadd.f32 %v137_v29, %v136_v24  ;;  %v162_v34 = vadd.f32 %v161_v30, %v160_v26  ;;  %v150_v36 = vadd.f32 %v149_v31, %v148_v25  ;;  %v153_v46 = vsel %vm110_vm1, %v477_v38, 0.0 }
  0xcf   :  { %v141_v51 = vadd.f32 %v140_v44, %v139_v37  ;;  %v154_v52 = vrot.slane %v153_v46, 4  ;;  %v124_v61 = vadd.f32 %v123_v58, %v122_v54  ;;  %v279_v25 = vrot.slane %v278_v20, 4 }
  0xd0   :  { %189 = vperm.xlu1 %445, %v475_v28   ;;  %344 = vperm.xlu0 %444, %v138_v33   ;;  %v163_v39 = vrot.slane %v162_v34, 2  ;;  %v151_v40 = vrot.slane %v150_v36, 1  ;;  %v288_v28 = vrot.slane %v287_v19, 2  ;;  %v313_v54 = vsel %vm53_vm0, %v609_v21, 0.0 }
  0xd1   :  { %v142_v55 = vrot.slane %v141_v51, 2  ;;  %v155_v56 = vadd.f32 %v154_v52, %v153_v46  ;;  %v280_v35 = vadd.f32 %v279_v25, %v278_v20 }
  0xd2   :  { %v164_v42 = vadd.f32 %v163_v39, %v162_v34  ;;  %v152_v45 = vadd.f32 %v151_v40, %v150_v36  ;;  %v300_v39 = vrot.slane %v299_v32, 4 }
  0xd3   :  { %v143_v59 = vadd.f32 %v142_v55, %v141_v51  ;;  %v156_v60 = vrot.slane %v155_v56, 2 }
  0xd4   :  { %194 = vperm.xlu1 %445, %v471_v14   ;;  %v165_v47 = vrot.slane %v164_v42, 1  ;;  %354 = vperm.xlu0 %444, %v152_v45   ;;  %v292_v14 = vsel %vm53_vm0, %v588_v5, 0.0  ;;  %v281_v45 = vrot.slane %v280_v35, 2  ;;  %v301_v50 = vadd.f32 %v300_v39, %v299_v32 }
  0xd5   :  { %v144_v62 = vrot.slane %v143_v59, 1  ;;  %v157_v63 = vadd.f32 %v156_v60, %v155_v56  ;;  %v293_v16 = vrot.slane %v292_v14, 4  ;;  %v320_v56 = vsel %vm53_vm0, %v604_v17, 0.0 }
  0xd6   :  { %v166_v49 = vadd.f32 %v165_v47, %v164_v42  ;;  %v282_v60 = vadd.f32 %v281_v45, %v280_v35 }
  0xd7   :  { %v145_v1 = vadd.f32 %v144_v62, %v143_v59  ;;  %v158_v3 = vrot.slane %v157_v63, 1  ;;  %v294_v24 = vadd.f32 %v293_v16, %v292_v14  ;;  %v321_v14 = vrot.slane %v320_v56, 4 }
  0xd8   :  { %199 = vperm.xlu1 %445, %v477_v38   ;;  %364 = vperm.xlu0 %444, %v166_v49   ;;  %v289_v38 = vadd.f32 %v288_v28, %v287_v19  ;;  %v283_v39 = vrot.slane %v282_v60, 1 }
  0xd9   :  { %v159_v4 = vadd.f32 %v158_v3, %v157_v63  ;;  %v295_v34 = vrot.slane %v294_v24, 2  ;;  %v314_v3 = vrot.slane %v313_v54, 4 }
  0xda   :  { %v290_v49 = vrot.slane %v289_v38, 1 }
  0xdb   :  { %v296_v44 = vadd.f32 %v295_v34, %v294_v24 }
  0xdc   :  { %204 = vperm.xlu1 %445, %v473_v22   ;;  %v273_v22 = vadd.f32 %v272_v15, %v271_v10  ;;  %v291_v9 = vadd.f32 %v290_v49, %v289_v38 }
  0xdd   :  { %v297_v59 = vrot.slane %v296_v44, 1 }
  0xde   :  { %v274_v31 = vrot.slane %v273_v22, 2 }
  0xdf   :  { %v298_v34 = vadd.f32 %v297_v59, %v296_v44 }
  0xe0   :  { %329 = vperm.xlu1 %445, %v117_v57  }
  0xe4   :  { %334 = vperm.xlu1 %445, %v124_v61  }
  0xe8   :  { %349 = vperm.xlu1 %445, %v145_v1   ;;  %v302_v1 = vrot.slane %v301_v50, 2 }
  0xea   :  { %v303_v25 = vadd.f32 %v302_v1, %v301_v50  ;;  %v284_v50 = vadd.f32 %v283_v39, %v282_v60 }
  0xec   :  { %359 = vperm.xlu1 %445, %v159_v4  }
 0x13f   :  { %v170_v23 = vpop.permute.xlu0 %169 }
 0x140   :  { %v207_v29 = vmul.f32 %v170_v23, %v584_v2  ;;  %v275_v2 = vadd.f32 %v274_v31, %v273_v22 }
 0x142   :  { %v276_v53 = vrot.slane %v275_v2, 1 }
 0x143   :  { %v175_v7 = vpop.permute.xlu1 %174 }
 0x144   :  { %v208_v33 = vmul.f32 %v175_v7, %v590_v6  ;;  %v277_v19 = vadd.f32 %v276_v53, %v275_v2  ;;  %v385_v2 = vmul.f32 1e-10, %v291_v9 }
 0x146   :  { %v222_v42 = vsel %vm53_vm0, %v208_v33, 0.0 }
 0x147   :  { %v180_v11 = vpop.permute.xlu1 %179  ;;  %v223_v55 = vrot.slane %v222_v42, 4 }
 0x148   :  { %v209_v26 = vmul.f32 %v180_v11, %v579_v0  ;;  %v215_v0 = vsel %vm53_vm0, %v207_v29, 0.0 }
 0x149   :  { %v216_v46 = vrot.slane %v215_v0, 4  ;;  %v224_v11 = vadd.f32 %v223_v55, %v222_v42 }
 0x14a   :  { %v229_v36 = vsel %vm53_vm0, %v209_v26, 0.0  ;;  %v315_v26 = vadd.f32 %v314_v3, %v313_v54  ;;  %v383_v54 = vmul.f32 1e-10, %v277_v19 }
 0x14b   :  { %v185_v18 = vpop.permute.xlu1 %184  ;;  %v230_v6 = vrot.slane %v229_v36, 4  ;;  %v340_v52 = vpop.permute.xlu0 %339  ;;  %v217_v61 = vadd.f32 %v216_v46, %v215_v0 }
 0x14c   :  { %v210_v30 = vmul.f32 %v185_v18, %v588_v5  ;;  %v306_v5 = vsel %vm53_vm0, %v598_v12, 0.0  ;;  %v316_v0 = vrot.slane %v315_v26, 2 }
 0x14d   :  { %v307_v51 = vrot.slane %v306_v5, 4  ;;  %v218_v20 = vrot.slane %v217_v61, 2 }
 0x14e   :  { %v236_v40 = vsel %vm53_vm0, %v210_v30, 0.0  ;;  %v322_v30 = vadd.f32 %v321_v14, %v320_v56 }
 0x14f   :  { %v190_v27 = vpop.permute.xlu1 %189  ;;  %v237_v47 = vrot.slane %v236_v40, 4  ;;  %v308_v10 = vadd.f32 %v307_v51, %v306_v5  ;;  %v345_v16 = vpop.permute.xlu0 %344  ;;  %v317_v51 = vadd.f32 %v316_v0, %v315_v26 }
 0x150   :  { %v211_v43 = vmul.f32 %v190_v27, %v593_v8  ;;  %v231_v8 = vadd.f32 %v230_v6, %v229_v36  ;;  %v219_v36 = vadd.f32 %v218_v20, %v217_v61  ;;  %v304_v6 = vrot.slane %v303_v25, 1 }
 0x151   :  { %v238_v62 = vadd.f32 %v237_v47, %v236_v40  ;;  %v309_v35 = vrot.slane %v308_v10, 2  ;;  %v318_v9 = vrot.slane %v317_v51, 1 }
 0x152   :  { %v243_v57 = vsel %vm53_vm0, %v211_v43, 0.0  ;;  %v232_v15 = vrot.slane %v231_v8, 2  ;;  %v323_v43 = vrot.slane %v322_v30, 2 }
 0x153   :  { %v195_v37 = vpop.permute.xlu1 %194  ;;  %v244_v13 = vrot.slane %v243_v57, 4  ;;  %v239_v22 = vrot.slane %v238_v62, 2  ;;  %v355_v32 = vpop.permute.xlu0 %354  ;;  %v310_v47 = vadd.f32 %v309_v35, %v308_v10  ;;  %v319_v26 = vadd.f32 %v318_v9, %v317_v51 }
 0x154   :  { %v212_v41 = vmul.f32 %v195_v37, %v598_v12  ;;  %v233_v31 = vadd.f32 %v232_v15, %v231_v8 }
 0x155   :  { %v245_v28 = vadd.f32 %v244_v13, %v243_v57  ;;  %v240_v37 = vadd.f32 %v239_v22, %v238_v62  ;;  %v305_v57 = vadd.f32 %v304_v6, %v303_v25 }
 0x156   :  { %v250_v12 = vsel %vm53_vm0, %v212_v41, 0.0  ;;  %v234_v45 = vrot.slane %v233_v31, 1 }
 0x157   :  { %v200_v48 = vpop.permute.xlu1 %199  ;;  %v251_v4 = vrot.slane %v250_v12, 4  ;;  %v246_v41 = vrot.slane %v245_v28, 2  ;;  %v241_v49 = vrot.slane %v240_v37, 1  ;;  %v365_v53 = vpop.permute.xlu0 %364  ;;  %v387_v22 = vmul.f32 1e-10, %v305_v57 }
 0x158   :  { %v213_v58 = vmul.f32 %v200_v48, %v609_v21  ;;  %v220_v48 = vrot.slane %v219_v36, 1  ;;  %v235_v59 = vadd.f32 %v234_v45, %v233_v31 }
 0x159   :  { %v252_v27 = vadd.f32 %v251_v4, %v250_v12  ;;  %v247_v12 = vadd.f32 %v246_v41, %v245_v28  ;;  %v242_v3 = vadd.f32 %v241_v49, %v240_v37  ;;  %v389_v41 = vmul.f32 1e-10, %v319_v26 }
 0x15a   :  { %v257_v18 = vsel %vm53_vm0, %v213_v58, 0.0  ;;  %v324_v58 = vadd.f32 %v323_v43, %v322_v30  ;;  %v221_v1 = vadd.f32 %v220_v48, %v219_v36 }
 0x15b   :  { %v205_v63 = vpop.permute.xlu1 %204  ;;  %v258_v29 = vrot.slane %v257_v18, 4  ;;  %v253_v40 = vrot.slane %v252_v27, 2  ;;  %v248_v13 = vrot.slane %v247_v12, 1 }
 0x15c   :  { %v214_v7 = vmul.f32 %v205_v63, %v604_v17  ;;  %v225_v17 = vrot.slane %v224_v11, 2  ;;  %v311_v63 = vrot.slane %v310_v47, 1 }
 0x15d   :  { %v259_v42 = vadd.f32 %v258_v29, %v257_v18  ;;  %v386_v18 = vmul.f32 1e-10, %v298_v34  ;;  %v249_v28 = vadd.f32 %v248_v13, %v247_v12 }
 0x15e   :  { %v264_v21 = vsel %vm53_vm0, %v214_v7, 0.0  ;;  %v226_v5 = vadd.f32 %v225_v17, %v224_v11  ;;  %v384_v7 = vmul.f32 1e-10, %v284_v50 }
 0x15f   :  { %v265_v23 = vrot.slane %v264_v21, 4  ;;  %v330_v24 = vpop.permute.xlu1 %329  ;;  %v260_v56 = vrot.slane %v259_v42, 2 }
 0x160   :  { %478 = vrcp.f32 %v330_v24  ;;  %v227_v55 = vrot.slane %v226_v5, 1 }
 0x161   :  { %480 = vrcp.f32 %v340_v52  ;;  %v266_v33 = vadd.f32 %v265_v23, %v264_v21  ;;  %v254_v52 = vadd.f32 %v253_v40, %v252_v27  ;;  %v261_v14 = vadd.f32 %v260_v56, %v259_v42 }
 0x162   :  { %482 = vrcp.f32 %v345_v16  ;;  %v228_v11 = vadd.f32 %v227_v55, %v226_v5  ;;  %v325_v21 = vrot.slane %v324_v58, 1  ;;  %v312_v23 = vadd.f32 %v311_v63, %v310_v47 }
 0x163   :  { %v335_v38 = vpop.permute.xlu1 %334  ;;  %v267_v46 = vrot.slane %v266_v33, 2  ;;  %v255_v10 = vrot.slane %v254_v52, 1  ;;  %v262_v29 = vrot.slane %v261_v14, 1 }
 0x164   :  { %484 = vrcp.f32 %v335_v38  ;;  %v326_v34 = vadd.f32 %v325_v21, %v324_v58  ;;  %v388_v39 = vmul.f32 1e-10, %v312_v23 }
 0x165   :  { %486 = vrcp.f32 %v355_v32  ;;  %v268_v61 = vadd.f32 %v267_v46, %v266_v33  ;;  %v256_v27 = vadd.f32 %v255_v10, %v254_v52  ;;  %v263_v42 = vadd.f32 %v262_v29, %v261_v14 }
 0x166   :  { %v390_v47 = vmul.f32 1e-10, %v326_v34 }
 0x167   :  { %v350_v44 = vpop.permute.xlu1 %349  ;;  %v269_v20 = vrot.slane %v268_v61, 1 }
 0x168   :  { %488 = vrcp.f32 %v350_v44 }
 0x169   :  { %490 = vrcp.f32 %v365_v53  ;;  %v270_v35 = vadd.f32 %v269_v20, %v268_v61 }
 0x16a   :  { %v479_v8 = vpop.eup %478 }
 0x16b   :  { %v481_v62 = vpop.eup %480  ;;  %v360_v4 = vpop.permute.xlu1 %359  ;;  %v368_v15 = vmul.f32 %v479_v8, %v221_v1 }
 0x16c   :  { %v483_v60 = vpop.eup %482  ;;  %492 = vrcp.f32 %v360_v4  ;;  %v372_v19 = vmul.f32 %v481_v62, %v235_v59 }
 0x16d   :  { %v374_v24 = vmul.f32 %v483_v60, %v242_v3  ;;  %v391_v30 = vadd.f32 %v383_v54, %v368_v15 }
 0x16e   :  { %v485_v16 = vpop.eup %484  ;;  %v393_v33 = vadd.f32 %v385_v2, %v372_v19 }
 0x16f   :  { %v370_v25 = vmul.f32 %v485_v16, %v228_v11  ;;  %v487_v17 = vpop.eup %486  ;;  %v394_v36 = vadd.f32 %v386_v18, %v374_v24 }
 0x170   :  { %v378_v0 = vmul.f32 %v487_v17, %v256_v27 }
 0x171   :  { %v392_v31 = vadd.f32 %v384_v7, %v370_v25 }
 0x172   :  { %v489_v32 = vpop.eup %488  ;;  %v396_v49 = vadd.f32 %v388_v39, %v378_v0 }
 0x173   :  { %v376_v37 = vmul.f32 %v489_v32, %v249_v28  ;;  %v408_v38 = vsel %vm407_vm2, %v392_v31, %v391_v30  ;;  %v491_v5 = vpop.eup %490 }
 0x174   :  { %v410_v40 = vsel %vm409_vm3, %v393_v33, %v408_v38  ;;  %v382_v46 = vmul.f32 %v491_v5, %v270_v35 }
 0x175   :  { %v395_v6 = vadd.f32 %v387_v22, %v376_v37  ;;  %v412_v43 = vsel %vm411_vm4, %v394_v36, %v410_v40 }
 0x176   :  { %v493_v45 = vpop.eup %492  ;;  %v398_v50 = vadd.f32 %v390_v47, %v382_v46 }
 0x177   :  { %v380_v2 = vmul.f32 %v493_v45, %v263_v42  ;;  %v414_v48 = vsel %vm413_vm5, %v395_v6, %v412_v43 }
 0x178   :  { %v416_v51 = vsel %vm415_vm6, %v396_v49, %v414_v48 }
 0x179   :  { %v397_v44 = vadd.f32 %v389_v41, %v380_v2 }
 0x17b   :  { %v418_v52 = vsel %vm417_vm7, %v397_v44, %v416_v51 }
 0x17c   :  { %v420_v53 = vsel %vm419_vm8, %v398_v50, %v418_v52 }
 0x17d   :  { %422 = vst.msk [vmem:[#allocation5] sm:$0xff] %vm53_vm0, %v420_v53 }
 0x17e   :  { %527 = shalt.err (!%p524_p12)
}
 0x17f   :  { %s528_s5 = scalar_lea.hbm %s674_s3, 128 }
 0x180   :  { %p529_p13 = scmp.ne.s32.totalorder %s674_s3, %s528_s5  ;;  %p532_p0 = scmp.lt.u32.totalorder %s528_s5, %s674_s3 }
 0x182   :  { %p534_p1 = pnand %p532_p0, %p529_p13 }
 0x184   :  { %537 = shalt.err (!%p534_p1)
}
 0x185   :  { %432 = dma.vmem_to_hbm [thread:$0]  %s430_s28, 128, %s674_s3, [#allocation4]  }
 0x186   :  { %540 = dma.done.wait [#allocation4], 128  }
 0x187   :  { %541 = vsyncadd [#allocation4], 4294967168 }
 0x188   :  { %436 = vsyncpa [#allocation3], 1 }
 0x189   :  { %437 = vsyncpa [#allocation4], 1 }

</bundles_post_ra>
